<compile_context>
chip_gen: v5e
topology: v5e:2x2
jax: 0.10.0
libtpu: 0.0.40
codegen_flags: <defaults>
</compile_context>

<pallas_src>
from functools import partial

import jax
import jax.numpy as jnp
import numpy as np
from jax.experimental import pallas as pl
from jax.experimental.pallas import tpu as pltpu


def _round_up(v, m):
    return ((v + m - 1) // m) * m


def pointnet_kernel(x_ref, w1t_ref, b1_ref, w2t_ref, b2_ref,
                    fw1_ref, fb1_ref, fw2_ref, fb2_ref,
                    o_ref, gmax_ref, *, n_valid, tn):
    n = pl.program_id(1)

    # --- init running max at the first point chunk of each cloud ---
    @pl.when(n == 0)
    def _():
        gmax_ref[...] = jnp.full(gmax_ref.shape, -jnp.inf, gmax_ref.dtype)

    # --- PointwiseMLP, channels on sublanes / points on lanes ---
    x = x_ref[0]                                                  # (Dp, TN)
    h = jnp.dot(w1t_ref[...], x,
                preferred_element_type=jnp.float32) + b1_ref[...]  # (K1, TN)
    h = jnp.maximum(h, 0.0)                                       # ReLU
    h = jnp.dot(w2t_ref[...], h.astype(w2t_ref.dtype),
                preferred_element_type=jnp.float32) + b2_ref[...]  # (K2, TN)
    # mlp_dolastReLU=False -> no ReLU after the last pointwise layer.

    # Mask padded point columns so they can never win the max (static branch).
    if n_valid is not None:
        col = jax.lax.broadcasted_iota(jnp.int32, h.shape, 1) + n * tn
        h = jnp.where(col < n_valid, h, -jnp.inf)

    # --- running global max pool over points (lane-axis reduce) ---
    gmax_ref[...] = jnp.maximum(gmax_ref[...],
                                jnp.max(h, axis=1, keepdims=True))   # (K2, 1)

    # --- tiny FC head, only on the last point chunk ---
    @pl.when(n == pl.num_programs(1) - 1)
    def _():
        g = gmax_ref[...]                                          # (K2, 1) f32
        # FC1 as broadcast-multiply + sublane reduce: row result, no transpose.
        f = jnp.sum(g * fw1_ref[...], axis=0, keepdims=True) + fb1_ref[...]  # (1, F1)
        f = jnp.maximum(f, 0.0)
        f = jnp.dot(f, fw2_ref[...],
                    preferred_element_type=jnp.float32) + fb2_ref[...]       # (1, F2p)
        o_ref[...] = f.reshape(o_ref.shape).astype(o_ref.dtype)


@partial(jax.jit, static_argnames=("compute_dtype",))
def pointcloud_encoder_forward(x, params, *, compute_dtype=jnp.bfloat16):
    """x: (B, N, Din) float32.  Returns (B, 1, F) like the PyTorch module."""
    B, N, Din = x.shape
    w1, b1, w2, b2, fw1, fb1, fw2, fb2 = params
    K1 = w1.shape[1]
    K2 = w2.shape[1]
    F1 = fw1.shape[1]
    F2 = fw2.shape[1]

    Dp = _round_up(max(Din, 8), 8)            # sublane-dense channel dim
    TN = min(_round_up(N, 128), 2048)         # lane-dense point chunk
    N_pad = _round_up(N, TN)
    F2p = _round_up(F2, 128)                  # lane-dense output block

    cd = compute_dtype

    # Single fused preprocessing pass: transpose to (B, Din, N), zero-pad
    # channels -> Dp and points -> N_pad, cast to the compute dtype.
    xp = jnp.pad(jnp.transpose(x, (0, 2, 1)),
                 ((0, 0), (0, Dp - Din), (0, N_pad - N))).astype(cd)

    # Pointwise weights transposed to (out, in): MXU M-dim = channel dim.
    w1t = jnp.pad(w1, ((0, Dp - Din), (0, 0))).T.astype(cd)        # (K1, Dp)
    w2t = w2.T.astype(cd)                                          # (K2, K1)
    b1c = b1.reshape(-1, 1).astype(jnp.float32)                    # (K1, 1)
    b2c = b2.reshape(-1, 1).astype(jnp.float32)                    # (K2, 1)

    # FC head stays in f32 (tiny); last layer zero-padded to 128 output lanes.
    fw1c = fw1.astype(jnp.float32)                                 # (K2, F1)
    fb1c = fb1.reshape(1, -1).astype(jnp.float32)                  # (1, F1)
    fw2c = jnp.pad(fw2, ((0, 0), (0, F2p - F2))).astype(jnp.float32)          # (F1, F2p)
    fb2c = jnp.pad(fb2.reshape(1, -1), ((0, 0), (0, F2p - F2))).astype(jnp.float32)

    grid = (B, N_pad // TN)
    kernel = partial(pointnet_kernel,
                     n_valid=(N if N_pad != N else None), tn=TN)

    flops = 2 * B * N_pad * (Dp * K1 + K1 * K2) + 2 * B * (K2 * F1 + F1 * F2p)
    bytes_accessed = (xp.size * xp.dtype.itemsize + B * F2p * 4
                      + sum(a.size * a.dtype.itemsize
                            for a in (w1t, w2t, b1c, b2c, fw1c, fb1c, fw2c, fb2c)))

    out = pl.pallas_call(
        kernel,
        out_shape=jax.ShapeDtypeStruct((B, 1, F2p), jnp.float32),
        grid=grid,
        in_specs=[
            pl.BlockSpec((1, Dp, TN), lambda b, n: (b, 0, n)),     # point-cloud chunk
            pl.BlockSpec(w1t.shape, lambda b, n: (0, 0)),
            pl.BlockSpec(b1c.shape, lambda b, n: (0, 0)),
            pl.BlockSpec(w2t.shape, lambda b, n: (0, 0)),
            pl.BlockSpec(b2c.shape, lambda b, n: (0, 0)),
            pl.BlockSpec(fw1c.shape, lambda b, n: (0, 0)),
            pl.BlockSpec(fb1c.shape, lambda b, n: (0, 0)),
            pl.BlockSpec(fw2c.shape, lambda b, n: (0, 0)),
            pl.BlockSpec(fb2c.shape, lambda b, n: (0, 0)),
        ],
        out_specs=pl.BlockSpec((1, 1, F2p), lambda b, n: (b, 0, 0)),
        scratch_shapes=[pltpu.VMEM((K2, 1), jnp.float32)],          # running max column
        compiler_params=pltpu.CompilerParams(
            dimension_semantics=("parallel", "arbitrary")),
        cost_estimate=pl.CostEstimate(flops=flops, transcendentals=0,
                                      bytes_accessed=bytes_accessed),
    )(xp, w1t, b1c, w2t, b2c, fw1c, fb1c, fw2c, fb2c)

    # f.unsqueeze(1) semantics, dropping the output lane padding.
    return out[:, :, :F2]


def pointcloud_encoder_reference(x, params):
    """Pure-JAX f32 reference (matches the PyTorch forward)."""
    w1, b1, w2, b2, fw1, fb1, fw2, fb2 = params
    h = jnp.maximum(x @ w1 + b1, 0.0)
    h = h @ w2 + b2                       # mlp_dolastReLU=False
    g = jnp.max(h, axis=1)                # global max pool over points
    f = jnp.maximum(g @ fw1 + fb1, 0.0)
    f = f @ fw2 + fb2
    return f[:, None, :]


def _init_linear(key, din, dout):
    """Deterministic nn.Linear-style init; weights stored as (in, out)."""
    kw, kb = jax.random.split(key)
    bound = 1.0 / jnp.sqrt(float(din))
    w = jax.random.uniform(kw, (din, dout), jnp.float32, -bound, bound)
    b = jax.random.uniform(kb, (1, dout), jnp.float32, -bound, bound)
    return w, b


if __name__ == "__main__":
    key = jax.random.PRNGKey(0)
    B, N = 2, 16
    mlp_dims = (3, 32, 64)        # PointwiseMLP dims
    fc_dims = (64, 32, 16)        # FC dims; fc_dims[0] == mlp_dims[-1]
    assert mlp_dims[-1] == fc_dims[0]

    k0, k1, k2, k3, kx = jax.random.split(key, 5)
    w1, b1 = _init_linear(k0, mlp_dims[0], mlp_dims[1])
    w2, b2 = _init_linear(k1, mlp_dims[1], mlp_dims[2])
    fw1, fb1 = _init_linear(k2, fc_dims[0], fc_dims[1])
    fw2, fb2 = _init_linear(k3, fc_dims[1], fc_dims[2])
    params = (w1, b1, w2, b2, fw1, fb1, fw2, fb2)

    x = jax.random.normal(kx, (B, N, mlp_dims[0]), jnp.float32)

    # f32 path: structural check against the pure-JAX reference.
    out_f32 = pointcloud_encoder_forward(x, params, compute_dtype=jnp.float32)
    jax.block_until_ready(out_f32)
    ref = pointcloud_encoder_reference(x, params)
    np.testing.assert_allclose(np.asarray(out_f32), np.asarray(ref),
                               atol=1e-4, rtol=1e-4)

    # bf16 path (default, MXU-friendly on v6e/v7x; f32 accumulation).
    out = pointcloud_encoder_forward(x, params)
    jax.block_until_ready(out)
    assert out.shape == (B, 1, fc_dims[-1]), out.shape
    print("KERNEL_OK")
</pallas_src>

<mosaic_0001>
module attributes {stable_mosaic.version = 11 : i64} {
  func.func @pointnet_kernel(%arg0: i32, %arg1: i32, %arg2: memref<1x8x128xf32, #tpu.memory_space<vmem>>, %arg3: memref<32x8xf32, #tpu.memory_space<vmem>>, %arg4: memref<32x1xf32, #tpu.memory_space<vmem>>, %arg5: memref<64x32xf32, #tpu.memory_space<vmem>>, %arg6: memref<64x1xf32, #tpu.memory_space<vmem>>, %arg7: memref<64x32xf32, #tpu.memory_space<vmem>>, %arg8: memref<1x32xf32, #tpu.memory_space<vmem>>, %arg9: memref<32x128xf32, #tpu.memory_space<vmem>>, %arg10: memref<1x128xf32, #tpu.memory_space<vmem>>, %arg11: memref<1x1x128xf32, #tpu.memory_space<vmem>>, %arg12: memref<64x1xf32, #tpu.memory_space<vmem>>) attributes {dimension_semantics = [#tpu.dimension_semantics<parallel>, #tpu.dimension_semantics<arbitrary>], iteration_bounds = array<i64: 2, 1>, scalar_prefetch = 0 : i64, scratch_operands = 1 : i64, tpu.core_type = #tpu.core_type<tc>, window_params = [{transform_indices = @transform_0, window_bounds = array<i64: 1, 8, 128>}, {pipeline_mode = #tpu.pipeline_mode<synchronous>, transform_indices = @transform_1, window_bounds = array<i64: 32, 8>}, {pipeline_mode = #tpu.pipeline_mode<synchronous>, transform_indices = @transform_2, window_bounds = array<i64: 32, 1>}, {pipeline_mode = #tpu.pipeline_mode<synchronous>, transform_indices = @transform_3, window_bounds = array<i64: 64, 32>}, {pipeline_mode = #tpu.pipeline_mode<synchronous>, transform_indices = @transform_4, window_bounds = array<i64: 64, 1>}, {pipeline_mode = #tpu.pipeline_mode<synchronous>, transform_indices = @transform_5, window_bounds = array<i64: 64, 32>}, {pipeline_mode = #tpu.pipeline_mode<synchronous>, transform_indices = @transform_6, window_bounds = array<i64: 1, 32>}, {pipeline_mode = #tpu.pipeline_mode<synchronous>, transform_indices = @transform_7, window_bounds = array<i64: 32, 128>}, {pipeline_mode = #tpu.pipeline_mode<synchronous>, transform_indices = @transform_8, window_bounds = array<i64: 1, 128>}, {transform_indices = @transform_9, window_bounds = array<i64: 1, 1, 128>}]} {
    %c0_i32 = arith.constant 0 : i32
    %0 = arith.cmpi eq, %arg1, %c0_i32 : i32
    %1 = arith.extui %0 : i1 to i32
    %c0_i32_0 = arith.constant 0 : i32
    %2 = arith.cmpi ne, %1, %c0_i32_0 : i32
    scf.if %2 {
      %cst_21 = arith.constant 0xFF800000 : f32
      %33 = vector.broadcast %cst_21 : f32 to vector<64x1xf32>
      %c0_22 = arith.constant 0 : index
      %c0_23 = arith.constant 0 : index
      %34 = vector.load %arg12[%c0_22, %c0_23] : memref<64x1xf32, #tpu.memory_space<vmem>>, vector<64x1xf32>
      tpu.vector_store %arg12[%c0_22, %c0_23], %33 {strides = array<i32>} : memref<64x1xf32, #tpu.memory_space<vmem>>, vector<64x1xf32>,
    } else {
    }
    %c0 = arith.constant 0 : index
    %c0_1 = arith.constant 0 : index
    %c0_2 = arith.constant 0 : index
    %3 = vector.load %arg2[%c0, %c0_1, %c0_2] : memref<1x8x128xf32, #tpu.memory_space<vmem>>, vector<1x8x128xf32>
    %4 = vector.shape_cast %3 : vector<1x8x128xf32> to vector<8x128xf32>
    %c0_3 = arith.constant 0 : index
    %c0_4 = arith.constant 0 : index
    %5 = vector.load %arg3[%c0_3, %c0_4] : memref<32x8xf32, #tpu.memory_space<vmem>>, vector<32x8xf32>
    %cst = arith.constant dense<0.000000e+00> : vector<32x128xf32>
    %6 = tpu.matmul %5, %4, %cst {dimension_numbers = #tpu.dot_dimension_numbers<[1], [0], [0], [1], [0, 0, 1, 1], [], []>} : vector<32x8xf32>, vector<8x128xf32>, vector<32x128xf32> -> vector<32x128xf32>
    %c0_5 = arith.constant 0 : index
    %c0_6 = arith.constant 0 : index
    %7 = vector.load %arg4[%c0_5, %c0_6] : memref<32x1xf32, #tpu.memory_space<vmem>>, vector<32x1xf32>
    %8 = vector.broadcast %7 : vector<32x1xf32> to vector<32x128xf32>
    %9 = arith.addf %6, %8 : vector<32x128xf32>
    %cst_7 = arith.constant 0.000000e+00 : f32
    %10 = vector.broadcast %cst_7 : f32 to vector<32x128xf32>
    %11 = arith.maximumf %9, %10 : vector<32x128xf32>
    %c0_8 = arith.constant 0 : index
    %c0_9 = arith.constant 0 : index
    %12 = vector.load %arg5[%c0_8, %c0_9] : memref<64x32xf32, #tpu.memory_space<vmem>>, vector<64x32xf32>
    %cst_10 = arith.constant dense<0.000000e+00> : vector<64x128xf32>
    %13 = tpu.matmul %12, %11, %cst_10 {dimension_numbers = #tpu.dot_dimension_numbers<[1], [0], [0], [1], [0, 0, 1, 1], [], []>} : vector<64x32xf32>, vector<32x128xf32>, vector<64x128xf32> -> vector<64x128xf32>
    %c0_11 = arith.constant 0 : index
    %c0_12 = arith.constant 0 : index
    %14 = vector.load %arg6[%c0_11, %c0_12] : memref<64x1xf32, #tpu.memory_space<vmem>>, vector<64x1xf32>
    %15 = vector.broadcast %14 : vector<64x1xf32> to vector<64x128xf32>
    %16 = arith.addf %13, %15 : vector<64x128xf32>
    %17 = tpu.iota {dimensions = array<i32: 1>} : vector<64x128xi32>
    %c128_i32 = arith.constant 128 : i32
    %18 = arith.muli %arg1, %c128_i32 : i32
    %19 = vector.broadcast %18 : i32 to vector<64x128xi32>
    %20 = arith.addi %17, %19 : vector<64x128xi32>
    %c16_i32 = arith.constant 16 : i32
    %21 = vector.broadcast %c16_i32 : i32 to vector<64x128xi32>
    %22 = arith.cmpi slt, %20, %21 : vector<64x128xi32>
    %cst_13 = arith.constant 0xFF800000 : f32
    %23 = vector.broadcast %cst_13 : f32 to vector<64x128xf32>
    %24 = arith.select %22, %16, %23 : vector<64x128xi1>, vector<64x128xf32>
    %c0_14 = arith.constant 0 : index
    %c0_15 = arith.constant 0 : index
    %25 = vector.load %arg12[%c0_14, %c0_15] : memref<64x1xf32, #tpu.memory_space<vmem>>, vector<64x1xf32>
    %cst_16 = arith.constant dense<0xFF800000> : vector<64xf32>
    %26 = vector.multi_reduction <maximumf>, %24, %cst_16 [1] : vector<64x128xf32> to vector<64xf32>
    %27 = vector.shape_cast %26 : vector<64xf32> to vector<64x1xf32>
    %28 = arith.maximumf %25, %27 : vector<64x1xf32>
    %c0_17 = arith.constant 0 : index
    %c0_18 = arith.constant 0 : index
    %29 = vector.load %arg12[%c0_17, %c0_18] : memref<64x1xf32, #tpu.memory_space<vmem>>, vector<64x1xf32>
    tpu.vector_store %arg12[%c0_17, %c0_18], %28 {strides = array<i32>} : memref<64x1xf32, #tpu.memory_space<vmem>>, vector<64x1xf32>,
    %c0_i32_19 = arith.constant 0 : i32
    %30 = arith.cmpi eq, %arg1, %c0_i32_19 : i32
    %31 = arith.extui %30 : i1 to i32
    %c0_i32_20 = arith.constant 0 : i32
    %32 = arith.cmpi ne, %31, %c0_i32_20 : i32
    scf.if %32 {
      %c0_21 = arith.constant 0 : index
      %c0_22 = arith.constant 0 : index
      %33 = vector.load %arg12[%c0_21, %c0_22] : memref<64x1xf32, #tpu.memory_space<vmem>>, vector<64x1xf32>
      %c0_23 = arith.constant 0 : index
      %c0_24 = arith.constant 0 : index
      %34 = vector.load %arg7[%c0_23, %c0_24] : memref<64x32xf32, #tpu.memory_space<vmem>>, vector<64x32xf32>
      %35 = vector.broadcast %33 : vector<64x1xf32> to vector<64x32xf32>
      %36 = arith.mulf %35, %34 : vector<64x32xf32>
      %cst_25 = arith.constant dense<0.000000e+00> : vector<32xf32>
      %37 = vector.multi_reduction <add>, %36, %cst_25 [0] : vector<64x32xf32> to vector<32xf32>
      %38 = vector.shape_cast %37 : vector<32xf32> to vector<1x32xf32>
      %c0_26 = arith.constant 0 : index
      %c0_27 = arith.constant 0 : index
      %39 = vector.load %arg8[%c0_26, %c0_27] : memref<1x32xf32, #tpu.memory_space<vmem>>, vector<1x32xf32>
      %40 = arith.addf %38, %39 : vector<1x32xf32>
      %cst_28 = arith.constant 0.000000e+00 : f32
      %41 = vector.broadcast %cst_28 : f32 to vector<1x32xf32>
      %42 = arith.maximumf %40, %41 : vector<1x32xf32>
      %c0_29 = arith.constant 0 : index
      %c0_30 = arith.constant 0 : index
      %43 = vector.load %arg9[%c0_29, %c0_30] : memref<32x128xf32, #tpu.memory_space<vmem>>, vector<32x128xf32>
      %cst_31 = arith.constant dense<0.000000e+00> : vector<1x128xf32>
      %44 = tpu.matmul %42, %43, %cst_31 {dimension_numbers = #tpu.dot_dimension_numbers<[1], [0], [0], [1], [0, 0, 1, 1], [], []>} : vector<1x32xf32>, vector<32x128xf32>, vector<1x128xf32> -> vector<1x128xf32>
      %c0_32 = arith.constant 0 : index
      %c0_33 = arith.constant 0 : index
      %45 = vector.load %arg10[%c0_32, %c0_33] : memref<1x128xf32, #tpu.memory_space<vmem>>, vector<1x128xf32>
      %46 = arith.addf %44, %45 : vector<1x128xf32>
      %47 = vector.shape_cast %46 : vector<1x128xf32> to vector<1x1x128xf32>
      %c0_34 = arith.constant 0 : index
      %c0_35 = arith.constant 0 : index
      %c0_36 = arith.constant 0 : index
      %48 = vector.load %arg11[%c0_34, %c0_35, %c0_36] : memref<1x1x128xf32, #tpu.memory_space<vmem>>, vector<1x1x128xf32>
      tpu.vector_store %arg11[%c0_34, %c0_35, %c0_36], %47 {strides = array<i32>} : memref<1x1x128xf32, #tpu.memory_space<vmem>>, vector<1x1x128xf32>,
    } else {
    }
    return
  }
  func.func @transform_0(%arg0: i32, %arg1: i32) -> (i32, i32, i32) {
    %c0_i32 = arith.constant 0 : i32
    %c0_i32_0 = arith.constant 0 : i32
    return %arg0, %c0_i32, %arg1 : i32, i32, i32
  }
  func.func @transform_1(%arg0: i32, %arg1: i32) -> (i32, i32) {
    %c0_i32 = arith.constant 0 : i32
    %c0_i32_0 = arith.constant 0 : i32
    %c0_i32_1 = arith.constant 0 : i32
    return %c0_i32, %c0_i32_0 : i32, i32
  }
  func.func @transform_2(%arg0: i32, %arg1: i32) -> (i32, i32) {
    %c0_i32 = arith.constant 0 : i32
    %c0_i32_0 = arith.constant 0 : i32
    %c0_i32_1 = arith.constant 0 : i32
    return %c0_i32, %c0_i32_0 : i32, i32
  }
  func.func @transform_3(%arg0: i32, %arg1: i32) -> (i32, i32) {
    %c0_i32 = arith.constant 0 : i32
    %c0_i32_0 = arith.constant 0 : i32
    %c0_i32_1 = arith.constant 0 : i32
    return %c0_i32, %c0_i32_0 : i32, i32
  }
  func.func @transform_4(%arg0: i32, %arg1: i32) -> (i32, i32) {
    %c0_i32 = arith.constant 0 : i32
    %c0_i32_0 = arith.constant 0 : i32
    %c0_i32_1 = arith.constant 0 : i32
    return %c0_i32, %c0_i32_0 : i32, i32
  }
  func.func @transform_5(%arg0: i32, %arg1: i32) -> (i32, i32) {
    %c0_i32 = arith.constant 0 : i32
    %c0_i32_0 = arith.constant 0 : i32
    %c0_i32_1 = arith.constant 0 : i32
    return %c0_i32, %c0_i32_0 : i32, i32
  }
  func.func @transform_6(%arg0: i32, %arg1: i32) -> (i32, i32) {
    %c0_i32 = arith.constant 0 : i32
    %c0_i32_0 = arith.constant 0 : i32
    %c0_i32_1 = arith.constant 0 : i32
    return %c0_i32, %c0_i32_0 : i32, i32
  }
  func.func @transform_7(%arg0: i32, %arg1: i32) -> (i32, i32) {
    %c0_i32 = arith.constant 0 : i32
    %c0_i32_0 = arith.constant 0 : i32
    %c0_i32_1 = arith.constant 0 : i32
    return %c0_i32, %c0_i32_0 : i32, i32
  }
  func.func @transform_8(%arg0: i32, %arg1: i32) -> (i32, i32) {
    %c0_i32 = arith.constant 0 : i32
    %c0_i32_0 = arith.constant 0 : i32
    %c0_i32_1 = arith.constant 0 : i32
    return %c0_i32, %c0_i32_0 : i32, i32
  }
  func.func @transform_9(%arg0: i32, %arg1: i32) -> (i32, i32, i32) {
    %c0_i32 = arith.constant 0 : i32
    %c0_i32_0 = arith.constant 0 : i32
    %c0_i32_1 = arith.constant 0 : i32
    return %arg0, %c0_i32, %c0_i32_0 : i32, i32, i32
  }
}

</mosaic_0001>

<bundles_post_ra>
// kernel: pointcloud_encoder_forward.1
= control target key start
LH: loop header
LB: loop body
LE: loop exit
PB: predicated region body
PF: predicated region fallthrough
CT: control target
= control target key end

     0   :  { %s1291_s0 = inlined_call_operand.vmem [shape: f32[2,8,128], index: 0, kind: input, shape index: {}]   ;;  %s1292_s1 = inlined_call_operand.vmem [shape: f32[32,8], index: 1, kind: input, shape index: {}]   ;;  %s1293_s2 = inlined_call_operand.vmem [shape: f32[32,1], index: 2, kind: input, shape index: {}]   ;;  %s1294_s3 = inlined_call_operand.vmem [shape: f32[64,32], index: 3, kind: input, shape index: {}]   ;;  %s1295_s4 = inlined_call_operand.vmem [shape: f32[64,1], index: 4, kind: input, shape index: {}]   ;;  %s1296_s5 = inlined_call_operand.vmem [shape: f32[64,32], index: 5, kind: input, shape index: {}]   ;;  %s1297_s6 = inlined_call_operand.vmem [shape: f32[1,32], index: 6, kind: input, shape index: {}]   ;;  %s1298_s7 = inlined_call_operand.vmem [shape: f32[32,128], index: 7, kind: input, shape index: {}]   ;;  %s1299_s8 = inlined_call_operand.vmem [shape: f32[1,128], index: 8, kind: input, shape index: {}]   ;;  %s1300_s9 = inlined_call_operand.hbm [shape: f32[2,1,128], index: 9, kind: output, shape index: {}]  }
   0x1   :  { %1301 = sst [smem:[#allocation6_spill]] %s1291_s0 }
   0x2   :  { %14 = vsyncpa [#allocation4], 0 }
   0x3   :  { %16 = vsyncpa [#allocation4 + $0x1], 0  ;;  %s1035_s30 = smov 0   ;;  %s1037_s10 = smov 0  }
   0x4   :  { %s1039_s11 = smov 0   ;;  %s1041_s12 = smov 0  }
   0x5   :  { %s1043_s13 = smov 0   ;;  %s1045_s14 = smov 0  }
   0x6 LB: > { %s814_s15 = sadd.s32 4294967295, %s981_s14   ;;  %s815_s16 = sadd.s32 4294967294, %s981_s14   ;;  %s981_s14 = sphi %s1045_s14, %s22_s14   ;;  %s977_s13 = sphi %s1043_s13, %s1309_s13   ;;  %s973_s12 = sphi %s1041_s12, %s1308_s12   ;;  %s969_s11 = sphi %s1039_s11, %s1307_s11   ;;  %s965_s10 = sphi %s1037_s10, %s1306_s10   ;;  %s961_s30 = sphi %s1035_s30, %s1305_s30  }
   0x7   : > { %s34_s17 = sadd.s32 1, %s977_s13  ;;  %s237_s18 = sadd.s32 1, %s969_s11 }
   0x8   : > { %p36_p0 = scmp.ge.s32.totalorder %s34_s17, 2  ;;  %p247_p1 = scmp.ne.s32.totalorder %s969_s11, %s965_s10 }
   0x9   : > { %p248_p2 = scmp.eq.s32.totalorder %s814_s15, 1  ;;  %p253_p3 = scmp.ne.s32.totalorder %s965_s10, %s961_s30 }
   0xa   : > { %s1311_s17 = smov (%p36_p0, %s34_s17), 0  ;;  %p254_p5 = scmp.eq.s32.totalorder %s815_s16, 1 }
   0xb   : > { %p1075_p4 = por %p248_p2, %p247_p1  ;;  %s234_s20 = ssub.s32 %s977_s13, %s1311_s17 }
   0xc   : > { %p818_p6 = scmp.ge.s32.totalorder %s981_s14, 1  ;;  %p235_p7 = scmp.eq.s32.totalorder %s234_s20, 0 }
   0xd   : > { %p1082_p8 = por %p254_p5, %p253_p3  ;;  %p306_p9 = scmp.lt.s32.totalorder %s981_s14, 3 }
   0xe   : > { %s1088_s22 = scalar_select %p235_p7, %s969_s11, %s237_s18  }
   0xf   : > { %p307_p10 = pnand %p818_p6, %p306_p9 }
  0x10   : > { %p343_p11 = scmp.lt.s32.totalorder (!%p307_p10), %s973_s12, 1  ;;  %s1304_s0 = sld [smem:[#allocation6_spill]] (!%p307_p10) }
  0x11   : > { %310 = sbr.rel (%p307_p10) target bundleno = 749 (0x2ed), region = 56  ;;  %s341_s25 = sand.u32 (!%p307_p10), 1, %s965_s10  }
  0x12   : > { %s736_s23 = scalar_lea.sflag (!%p307_p10), [#allocation4], %s341_s25 }
  0x16   : > { %v369_v0 = vld [vmem:[%s1293_s2 + $0x8] sm:$0xff]  ;;  %v371_v1 = vld [vmem:[%s1293_s2 + $0x18] sm:$0xff]  ;;  %v983_v2 = vmov 0   ;;  %s344_s27 = scalar_select %p343_p11, %s973_s12, 1  ;;  %v364_v3 = vld [vmem:[%s1292_s1] sm:$0xff]  ;;  %vm392_vm0 = vcmask 64512   ;;  %v560_v42 = vlaneseq }
  0x17   : > { %901 = vset.pattern.permute.xlu1 %v983_v2  ;;  %900 = vset.pattern.permute.xlu0 %v983_v2  ;;  %v368_v5 = vld [vmem:[%s1293_s2] sm:$0xff]  ;;  %v370_v6 = vld [vmem:[%s1293_s2 + $0x10] sm:$0xff]  ;;  %v365_v7 = vld [vmem:[%s1292_s1 + $0x8] sm:$0xff]  ;;  %vm494_vm1 = vcmask 261120   ;;  %vm354_vm2 = vcmask 7168   ;;  %v984_v45 = vmov -inf  }
  0x18   : > { %379 = vperm.xlu1 %901, %v369_v0   ;;  %389 = vperm.xlu0 %900, %v371_v1   ;;  %s819_s28 = sshll.u32 %s344_s27, 3  ;;  %v448_v8 = vld [vmem:[%s1295_s4 + $0x10] sm:$0xff]  ;;  %v449_v9 = vld [vmem:[%s1295_s4 + $0x18] sm:$0xff]  ;;  %v451_v11 = vld [vmem:[%s1295_s4 + $0x28] sm:$0xff]  ;;  %v561_v44 = vand.u32 127, %v560_v42  ;;  %355 = vst.msk [vmem:[#allocation2] sm:$0xff] %vm354_vm2, %v984_v45 }
  0x19   : > { %902 = vset.pattern.permute.xlu2 %v983_v2  ;;  %s349_s16 = scalar_lea.vmem %s1304_s0, %s819_s28  ;;  %v366_v10 = vld [vmem:[%s1292_s1 + $0x10] sm:$0xff]  ;;  %v367_v13 = vld [vmem:[%s1292_s1 + $0x18] sm:$0xff]  ;;  %v446_v19 = vld [vmem:[%s1295_s4] sm:$0xff]  ;;  %356 = vst.msk [vmem:[#allocation2 + $0x8] sm:$0xff] %vm354_vm2, %v984_v45  ;;  %s744_s28 = scalar_lea.hbm %s1300_s9, %s973_s12 }
  0x1a   : > { %v363_v4 = vld [vmem:[%s349_s16] sm:$0xff]  ;;  %v452_v12 = vld [vmem:[%s1295_s4 + $0x30] sm:$0xff]  ;;  %456 = vperm.xlu2 %902, %v446_v19   ;;  %v447_v27 = vld [vmem:[%s1295_s4 + $0x8] sm:$0xff]  ;;  %357 = vst.msk [vmem:[#allocation2 + $0x10] sm:$0xff] %vm354_vm2, %v984_v45  ;;  %vm565_vm3 = vcmp.lt.s32.totalorder %v561_v44, 16  ;;  %s342_s16 = scalar_lea.vmem [#allocation3], %s341_s25 }
  0x1b   : > { %420 = vmatpush.msra.mxu0 %v363_v4  ;;  %v438_v32 = vld [vmem:[%s1294_s3] sm:$0xff]  ;;  %v441_v33 = vld [vmem:[%s1294_s3 + $0x18] sm:$0xff]  ;;  %v443_v34 = vld [vmem:[%s1294_s3 + $0x28] sm:$0xff]  ;;  %358 = vst.msk [vmem:[#allocation2 + $0x18] sm:$0xff] %vm354_vm2, %v984_v45  ;;  %s746_s18 = sshll.u32 %s342_s16, 4  ;;  %s748_s20 = sshll.u32 %s744_s28, 4  ;;  %s747_s18 = int_to_ptr.vmem [resolvable:$true] %s746_s18  ;;  %s749_s20 = int_to_ptr.hbm [resolvable:$true] %s748_s20 }
  0x1c   : > { %820 = vmatmul.msk.f32.vlgmr.msra.gmra.mxu0 %vm392_vm0, %v364_v3  ;;  %v450_v35 = vld [vmem:[%s1295_s4 + $0x20] sm:$0xff]  ;;  %v439_v36 = vld [vmem:[%s1294_s3 + $0x8] sm:$0xff]  ;;  %v444_v38 = vld [vmem:[%s1294_s3 + $0x30] sm:$0xff]  ;;  %359 = vst.msk [vmem:[#allocation2 + $0x20] sm:$0xff] %vm354_vm2, %v984_v45  ;;  %s917_s24 = sshra.s32 %s749_s20, 4  ;;  %s923_s27 = scalar_lea.hbm %s1300_s9, 2  ;;  %s918_s24 = int_to_ptr.hbm [resolvable:$true] %s917_s24 }
  0x1d   : > { %v442_v37 = vld [vmem:[%s1294_s3 + $0x20] sm:$0xff]  ;;  %v453_v39 = vld [vmem:[%s1295_s4 + $0x38] sm:$0xff]  ;;  %v440_v40 = vld [vmem:[%s1294_s3 + $0x10] sm:$0xff]  ;;  %360 = vst.msk [vmem:[#allocation2 + $0x28] sm:$0xff] %vm354_vm2, %v984_v45  ;;  %s919_s0 = scalar_lea.hbm %s918_s24, 1  ;;  %p924_p1 = scmp.lt.s32.totalorder %s918_s24, %s1300_s9 }
  0x1e   : > { %v445_v41 = vld [vmem:[%s1294_s3 + $0x38] sm:$0xff]  ;;  %361 = vst.msk [vmem:[#allocation2 + $0x30] sm:$0xff] %vm354_vm2, %v984_v45  ;;  %p920_p12 = scmp.ne.s32.totalorder %s918_s24, %s919_s0  ;;  %p925_p2 = scmp.lt.s32.totalorder %s923_s27, %s919_s0 }
  0x1f   : > { %362 = vst.msk [vmem:[#allocation2 + $0x38] sm:$0xff] %vm354_vm2, %v984_v45 }
  0x20   : > { %374 = vperm.xlu1 %901, %v368_v5   ;;  %384 = vperm.xlu0 %900, %v370_v6   ;;  %p921_p13 = pnand %p920_p12, %p1075_p4  ;;  %p926_p3 = por %p925_p2, %p924_p1 }
  0x22   : > { %461 = vperm.xlu2 %902, %v447_v27   ;;  %p922_p0 = pneg %p921_p13 }
  0x24   : > { %821 = vmatmul.msk.f32.gmra.mxu0 %vm392_vm0, %v365_v7  ;;  %p927_p5 = pnand %p926_p3, %p922_p0 }
  0x28   : > { %466 = vperm.xlu0 %900, %v448_v8   ;;  %471 = vperm.xlu1 %901, %v449_v9  }
  0x2a   : > { %476 = vperm.xlu2 %902, %v450_v35   ;;  %v580_v35 = vld [vmem:[#allocation2 + $0x30] sm:$0xff] }
  0x2c   : > { %822 = vmatmul.msk.f32.gmra.mxu0 %vm392_vm0, %v366_v10 }
  0x30   : > { %481 = vperm.xlu0 %900, %v451_v11   ;;  %486 = vperm.xlu1 %901, %v452_v12  }
  0x32   : > { %491 = vperm.xlu2 %902, %v453_v39  }
  0x34   : > { %823 = vmatmul.msk.f32.gmra.mxu0 %vm392_vm0, %v367_v13  ;;  %v574_v13 = vld [vmem:[#allocation2] sm:$0xff] }
  0x74   : > { %v457_v43 = vpop.permute.xlu2 %456 }
  0x7c   : > { %v462_v48 = vpop.permute.xlu2 %461 }
  0x84   : > { %v477_v59 = vpop.permute.xlu2 %476 }
  0x8a   : > { %v390_v16 = vpop.permute.xlu0 %389  ;;  %v380_v17 = vpop.permute.xlu1 %379 }
  0x8c   : > { %v492_v7 = vpop.permute.xlu2 %491 }
  0x92   : > { %v385_v20 = vpop.permute.xlu0 %384  ;;  %v375_v24 = vpop.permute.xlu1 %374 }
  0x99   : > { %v422_v14 = vpop.f32.mrf.mxu0 }
  0x9a   : > { %v423_v28 = vadd.f32 %v422_v14, %v375_v24  ;;  %v467_v50 = vpop.permute.xlu0 %466  ;;  %v472_v51 = vpop.permute.xlu1 %471  ;;  %v576_v24 = vld [vmem:[#allocation2 + $0x10] sm:$0xff] }
  0x9c   : > { %v434_v31 = vmax.f32 %v423_v28, 0.0 }
  0xa1   : > { %v425_v15 = vpop.f32.mrf.mxu0 }
  0xa2   : > { %v426_v25 = vadd.f32 %v425_v15, %v380_v17  ;;  %v482_v60 = vpop.permute.xlu0 %481  ;;  %v487_v6 = vpop.permute.xlu1 %486  ;;  %v575_v17 = vld [vmem:[#allocation2 + $0x8] sm:$0xff] }
  0xa4   : > { %v435_v30 = vmax.f32 %v426_v25, 0.0  ;;  %v579_v25 = vld [vmem:[#allocation2 + $0x28] sm:$0xff] }
  0xa9   : > { %v428_v18 = vpop.f32.mrf.mxu0 }
  0xaa   : > { %v429_v22 = vadd.f32 %v428_v18, %v385_v20 }
  0xac   : > { %v436_v29 = vmax.f32 %v429_v22, 0.0 }
  0xb1   : > { %v431_v21 = vpop.f32.mrf.mxu0 }
  0xb2   : > { %v432_v23 = vadd.f32 %v431_v21, %v390_v16  ;;  %v577_v16 = vld [vmem:[#allocation2 + $0x18] sm:$0xff] }
  0xb4   : > { %v437_v26 = vmax.f32 %v432_v23, 0.0  ;;  %v578_v23 = vld [vmem:[#allocation2 + $0x20] sm:$0xff] }
  0xb6   : > { %531 = vmatpush.msra.mxu1 %v437_v26  ;;  %835 = vmatpush.msra.mxu2 %v437_v26 }
  0xb7   : > { %836 = vmatpush.msra.mxu3 %v437_v26 }
  0xb8   : > { %532 = vmatpush.msra.mxu1 %v436_v29  ;;  %837 = vmatpush.msra.mxu2 %v436_v29 }
  0xb9   : > { %838 = vmatpush.msra.mxu3 %v436_v29 }
  0xba   : > { %533 = vmatpush.msra.mxu1 %v435_v30  ;;  %839 = vmatpush.msra.mxu2 %v435_v30 }
  0xbb   : > { %840 = vmatpush.msra.mxu3 %v435_v30 }
  0xbc   : > { %534 = vmatpush.msra.mxu1 %v434_v31  ;;  %841 = vmatpush.msra.mxu2 %v434_v31 }
  0xbd   : > { %842 = vmatpush.msra.mxu3 %v434_v31  ;;  %824 = vmatmul.msk.f32.vlgmr.msra.gmra.mxu1 %vm494_vm1, %v438_v32 }
  0xbe   : > { %827 = vmatmul.msk.f32.vlgmr.msra.gmra.mxu2 %vm494_vm1, %v441_v33  ;;  %829 = vmatmul.msk.f32.vlgmr.msra.gmra.mxu3 %vm494_vm1, %v443_v34  ;;  %v581_v34 = vld [vmem:[#allocation2 + $0x38] sm:$0xff] }
  0xc5   : > { %825 = vmatmul.msk.f32.gmra.mxu1 %vm494_vm1, %v439_v36 }
  0xc6   : > { %828 = vmatmul.msk.f32.gmra.mxu2 %vm494_vm1, %v442_v37  ;;  %830 = vmatmul.msk.f32.gmra.mxu3 %vm494_vm1, %v444_v38 }
  0xcd   : > { %826 = vmatmul.msk.f32.gmra.mxu1 %vm494_vm1, %v440_v40 }
  0xce   : > { %831 = vmatmul.msk.f32.gmra.mxu3 %vm494_vm1, %v445_v41 }
 0x13a   : > { %v536_v46 = vpop.f32.mrf.mxu1 }
 0x13b   : > { %v537_v47 = vadd.f32 %v536_v46, %v457_v43  ;;  %v626_v46 = vld [vmem:[%s1296_s5] sm:$0xff] }
 0x13d   : > { %v566_v49 = vsel %vm565_vm3, %v537_v47, -inf  ;;  %v627_v47 = vld [vmem:[%s1296_s5 + $0x8] sm:$0xff] }
 0x13e   : > { %582 = vmax.xlane.f32.xlu0 %v566_v49 }
 0x141   : > { %v545_v52 = vpop.f32.mrf.mxu2  ;;  %v551_v53 = vpop.f32.mrf.mxu3 }
 0x142   : > { %v546_v54 = vadd.f32 %v545_v52, %v472_v51  ;;  %v539_v55 = vpop.f32.mrf.mxu1  ;;  %v552_v61 = vadd.f32 %v551_v53, %v482_v60  ;;  %v709_v52 = vld [vmem:[%s1298_s7 + $0x18] sm:$0xff] }
 0x143   : > { %v540_v56 = vadd.f32 %v539_v55, %v462_v48  ;;  %726 = vmatpush.msrb.mxu2 %v709_v52 }
 0x144   : > { %v569_v57 = vsel %vm565_vm3, %v546_v54, -inf  ;;  %v571_v5 = vsel %vm565_vm3, %v552_v61, -inf  ;;  %v708_v54 = vld [vmem:[%s1298_s7 + $0x10] sm:$0xff] }
 0x145   : > { %588 = vmax.xlane.f32.xlu2 %v569_v57  ;;  %v567_v58 = vsel %vm565_vm3, %v540_v56, -inf  ;;  %v707_v57 = vld [vmem:[%s1298_s7 + $0x8] sm:$0xff]  ;;  %727 = vmatpush.msrb.mxu2 %v708_v54 }
 0x146   : > { %584 = vmax.xlane.f32.xlu1 %v567_v58  ;;  %v629_v58 = vld [vmem:[%s1296_s5 + $0x18] sm:$0xff] }
 0x147   : > { %728 = vmatpush.msrb.mxu2 %v707_v57 }
 0x149   : > { %v548_v62 = vpop.f32.mrf.mxu2  ;;  %v554_v63 = vpop.f32.mrf.mxu3 }
 0x14a   : > { %v549_v0 = vadd.f32 %v548_v62, %v477_v59  ;;  %v542_v1 = vpop.f32.mrf.mxu1  ;;  %v555_v8 = vadd.f32 %v554_v63, %v487_v6  ;;  %v706_v62 = vld [vmem:[%s1298_s7] sm:$0xff] }
 0x14b   : > { %v543_v2 = vadd.f32 %v542_v1, %v467_v50  ;;  %v628_v50 = vld [vmem:[%s1296_s5 + $0x10] sm:$0xff]  ;;  %v631_v1 = vld [vmem:[%s1296_s5 + $0x28] sm:$0xff]  ;;  %729 = vmatpush.msrb.mxu2 %v706_v62 }
 0x14c   : > { %v570_v3 = vsel %vm565_vm3, %v549_v0, -inf  ;;  %v572_v12 = vsel %vm565_vm3, %v555_v8, -inf }
 0x14d   : > { %590 = vmax.xlane.f32.xlu0 %v570_v3  ;;  %v568_v4 = vsel %vm565_vm3, %v543_v2, -inf }
 0x14e   : > { %586 = vmax.xlane.f32.xlu2 %v568_v4  ;;  %592 = vmax.xlane.f32.xlu1 %v571_v5  ;;  %v630_v4 = vld [vmem:[%s1296_s5 + $0x20] sm:$0xff] }
 0x151   : > { %v557_v9 = vpop.f32.mrf.mxu3 }
 0x152   : > { %v558_v10 = vadd.f32 %v557_v9, %v492_v7  ;;  %v632_v9 = vld [vmem:[%s1296_s5 + $0x30] sm:$0xff] }
 0x154   : > { %v573_v11 = vsel %vm565_vm3, %v558_v10, -inf }
 0x155   : > { %596 = vmax.xlane.f32.xlu0 %v573_v11 }
 0x156   : > { %594 = vmax.xlane.f32.xlu2 %v572_v12 }
 0x1b1   : > { %v583_v14 = vpop.xlane.xlu0 %582 }
 0x1b2   : > { %v598_v15 = vmax.f32 %v574_v13, %v583_v14 }
 0x1b4   : > { %607 = vst.msk [vmem:[#allocation2] sm:$0xff] %vm354_vm2, %v598_v15 }
 0x1b8   : > { %v589_v18 = vpop.xlane.xlu2 %588 }
 0x1b9   : > { %v601_v19 = vmax.f32 %v577_v16, %v589_v18  ;;  %v585_v20 = vpop.xlane.xlu1 %584 }
 0x1ba   : > { %v599_v21 = vmax.f32 %v575_v17, %v585_v20  ;;  %v633_v17 = vld [vmem:[%s1296_s5 + $0x38] sm:$0xff] }
 0x1bb   : > { %610 = vst.msk [vmem:[#allocation2 + $0x18] sm:$0xff] %vm354_vm2, %v601_v19  ;;  %v618_v22 = vld [vmem:[#allocation2] sm:$0xff] }
 0x1bc   : > { %608 = vst.msk [vmem:[#allocation2 + $0x8] sm:$0xff] %vm354_vm2, %v599_v21  ;;  %636 = vperm.xlu1 %901, %v618_v22  }
 0x1c0   : > { %v591_v26 = vpop.xlane.xlu0 %590 }
 0x1c1   : > { %v602_v27 = vmax.f32 %v578_v23, %v591_v26  ;;  %v587_v28 = vpop.xlane.xlu2 %586  ;;  %v593_v29 = vpop.xlane.xlu1 %592 }
 0x1c2   : > { %v600_v30 = vmax.f32 %v576_v24, %v587_v28  ;;  %v603_v31 = vmax.f32 %v579_v25, %v593_v29  ;;  %v621_v33 = vld [vmem:[#allocation2 + $0x18] sm:$0xff]  ;;  %v703_v29 = vld [vmem:[%s1297_s6] sm:$0x1] }
 0x1c3   : > { %611 = vst.msk [vmem:[#allocation2 + $0x20] sm:$0xff] %vm354_vm2, %v602_v27  ;;  %v619_v32 = vld [vmem:[#allocation2 + $0x8] sm:$0xff] }
 0x1c4   : > { %609 = vst.msk [vmem:[#allocation2 + $0x10] sm:$0xff] %vm354_vm2, %v600_v30  ;;  %641 = vperm.xlu2 %902, %v619_v32   ;;  %651 = vperm.xlu1 %901, %v621_v33   ;;  %v710_v33 = vld [vmem:[%s1299_s8] sm:$0x1] }
 0x1c5   : > { %612 = vst.msk [vmem:[#allocation2 + $0x28] sm:$0xff] %vm354_vm2, %v603_v31 }
 0x1c8   : > { %v597_v36 = vpop.xlane.xlu0 %596 }
 0x1c9   : > { %v605_v37 = vmax.f32 %v581_v34, %v597_v36  ;;  %v595_v38 = vpop.xlane.xlu2 %594 }
 0x1ca   : > { %v604_v39 = vmax.f32 %v580_v35, %v595_v38  ;;  %v622_v43 = vld [vmem:[#allocation2 + $0x20] sm:$0xff] }
 0x1cb   : > { %614 = vst.msk [vmem:[#allocation2 + $0x38] sm:$0xff] %vm354_vm2, %v605_v37  ;;  %v620_v40 = vld [vmem:[#allocation2 + $0x10] sm:$0xff] }
 0x1cc   : > { %613 = vst.msk [vmem:[#allocation2 + $0x30] sm:$0xff] %vm354_vm2, %v604_v39  ;;  %v623_v41 = vld [vmem:[#allocation2 + $0x28] sm:$0xff]  ;;  %646 = vperm.xlu0 %900, %v620_v40  }
 0x1cd   : > { %661 = vperm.xlu2 %902, %v623_v41  }
 0x1d2   : > { %v625_v44 = vld [vmem:[#allocation2 + $0x38] sm:$0xff] }
 0x1d3   : > { %v624_v42 = vld [vmem:[#allocation2 + $0x30] sm:$0xff] }
 0x1d4   : > { %666 = vperm.xlu1 %901, %v624_v42   ;;  %656 = vperm.xlu0 %900, %v622_v43  }
 0x1dc   : > { %671 = vperm.xlu0 %900, %v625_v44  }
 0x21e   : > { %v642_v48 = vpop.permute.xlu2 %641 }
 0x21f   : > { %v675_v51 = vmul.f32 %v642_v48, %v627_v47 }
 0x221   : > { %v683_v60 = vsel %vm494_vm1, %v675_v51, 0.0 }
 0x227   : > { %v662_v2 = vpop.permute.xlu2 %661 }
 0x228   : > { %v679_v6 = vmul.f32 %v662_v2, %v631_v1 }
 0x22a   : > { %v691_v14 = vsel %vm494_vm1, %v679_v6, 0.0 }
 0x22e   : > { %v637_v45 = vpop.permute.xlu1 %636 }
 0x22f   : > { %v674_v49 = vmul.f32 %v637_v45, %v626_v46 }
 0x231   : > { %v682_v55 = vsel %vm494_vm1, %v674_v49, 0.0 }
 0x232   : > { %v684_v63 = vadd.f32 %v683_v60, %v682_v55 }
 0x236   : > { %v652_v59 = vpop.permute.xlu1 %651 }
 0x237   : > { %v677_v0 = vmul.f32 %v652_v59, %v629_v58 }
 0x239   : > { %v687_v7 = vsel %vm494_vm1, %v677_v0, 0.0 }
 0x23e   : > { %v647_v53 = vpop.permute.xlu0 %646 }
 0x23f   : > { %v676_v56 = vmul.f32 %v647_v53, %v628_v50 }
 0x241   : > { %v685_v61 = vsel %vm494_vm1, %v676_v56, 0.0 }
 0x242   : > { %v686_v3 = vadd.f32 %v685_v61, %v684_v63 }
 0x244   : > { %v688_v11 = vadd.f32 %v687_v7, %v686_v3 }
 0x246   : > { %v657_v5 = vpop.permute.xlu0 %656  ;;  %v667_v10 = vpop.permute.xlu1 %666 }
 0x247   : > { %v678_v8 = vmul.f32 %v657_v5, %v630_v4  ;;  %v680_v15 = vmul.f32 %v667_v10, %v632_v9 }
 0x249   : > { %v689_v12 = vsel %vm494_vm1, %v678_v8, 0.0  ;;  %v693_v19 = vsel %vm494_vm1, %v680_v15, 0.0 }
 0x24a   : > { %v690_v13 = vadd.f32 %v689_v12, %v688_v11 }
 0x24c   : > { %v692_v16 = vadd.f32 %v691_v14, %v690_v13 }
 0x24e   : > { %v672_v18 = vpop.permute.xlu0 %671  ;;  %v694_v21 = vadd.f32 %v693_v19, %v692_v16 }
 0x24f   : > { %v681_v20 = vmul.f32 %v672_v18, %v633_v17 }
 0x251   : > { %v695_v22 = vsel %vm494_vm1, %v681_v20, 0.0 }
 0x252   : > { %v696_v23 = vadd.f32 %v695_v22, %v694_v21 }
 0x254   : > { %v697_v24 = vrot.slane %v696_v23, 4 }
 0x256   : > { %v698_v25 = vadd.f32 %v697_v24, %v696_v23 }
 0x258   : > { %v699_v26 = vrot.slane %v698_v25, 2 }
 0x25a   : > { %v700_v27 = vadd.f32 %v699_v26, %v698_v25 }
 0x25c   : > { %v701_v28 = vrot.slane %v700_v27, 1 }
 0x25e   : > { %v702_v30 = vadd.f32 %v701_v28, %v700_v27 }
 0x260   : > { %v704_v31 = vadd.f32 %v703_v29, %v702_v30 }
 0x262   : > { %v705_v32 = vmax.f32 %v704_v31, 0.0 }
 0x264   : > { %832 = vmatmul.msk.f32.vlgmr.msrb.gmra.mxu2 %vm494_vm1, %v705_v32 }
 0x2e7   : > { %v731_v34 = vpop.f32.mrf.mxu2 }
 0x2e8   : > { %v732_v35 = vadd.f32 %v731_v34, %v710_v33 }
 0x2ea   : > { %734 = vst [vmem:[%s342_s16] sm:$0x1] %v732_v35 }
 0x2eb   : > { %930 = shalt.err (!%p927_p5)
}
 0x2ec   : > { %843 = dma.vmem_to_hbm [thread:$0]  (%p1075_p4), %s747_s18, 16, %s749_s20, %s736_s23  }
 0x2ed PF: > { %p849_p6 = scmp.ge.s32.totalorder %s981_s14, 2  ;;  %s760_s25 = sand.u32 1, %s961_s30  }
 0x2ee   : > { %s761_s28 = scalar_lea.sflag [#allocation4], %s760_s25 }
 0x2ef   : > { %p846_p7 = pnand %p849_p6, %p1082_p8 }
 0x2f1   : > { %p847_p9 = pneg %p846_p7 }
 0x2f3   : > { %956 = dma.done.wait (%p847_p9), %s761_s28, 16  }
 0x2f4   : > { %958 = vsyncadd (%p847_p9), %s761_s28, 4294967280  ;;  %s22_s14 = sadd.s32 1, %s981_s14   ;;  %s1305_s30 = smov %s965_s10 }
 0x2f5   : > { %p19_p10 = scmp.ge.s32.totalorder %s22_s14, 4   ;;  %s1306_s10 = smov %s969_s11 }
 0x2f6   : > { %s1307_s11 = smov %s1088_s22  ;;  %s1308_s12 = smov %s977_s13 }
 0x2f7   : > { %s1309_s13 = smov %s1311_s17  ;;  %21 = sbr.rel (!%p19_p10) target bundleno = 6 (0x6), region = 99 }
 0x2fc   :  { %766 = vsyncpa [#allocation4], 1 }
 0x2fd   :  { %768 = vsyncpa [#allocation4 + $0x1], 1 }

</bundles_post_ra>
